<compile_context>
chip_gen: v7x
topology: tpu7x:2x2x1
jax: 0.10.0
libtpu: 0.0.40
codegen_flags: <defaults>
</compile_context>

<pallas_src>
import math

import jax
import jax.numpy as jnp
from jax.experimental import pallas as pl
from jax.experimental.pallas import tpu as pltpu


def _round_up(x, m):
    return ((x + m - 1) // m) * m


# ---------------------------------------------------------------------------
# Pallas kernel: fused CompGCN.forward_isolated over all layers, one row tile
# ---------------------------------------------------------------------------
def _compgcn_fused_kernel(x_ref, w_ref, b_ref, o_ref):
    """x_ref: (TILE_M, Dp) f32   row tile of entity embeddings
       w_ref: (L, Dp, Dp) bf16   VMEM-resident loop weights (all layers)
       b_ref: (L, 1, Dp)  f32    VMEM-resident biases (all layers)
       o_ref: (TILE_M, Dp) f32
    """
    num_layers = w_ref.shape[0]
    x = x_ref[...]                                   # f32 (TILE_M, Dp)
    for l in range(num_layers):                      # static unroll, L small
        w = w_ref[l]                                 # bf16 (Dp, Dp)
        b = b_ref[l]                                 # f32 (1, Dp)
        # loop_message = x @ w_loop : bf16 MXU operands, f32 accumulate.
        loop_msg = jnp.dot(x.astype(jnp.bfloat16), w,
                           preferred_element_type=jnp.float32)
        # ent_embed = tanh(ent_embed + w_bias + loop_message)  (VPU + EUP, f32)
        x = jnp.tanh((x + b) + loop_msg)
    o_ref[...] = x.astype(o_ref.dtype)


# ---------------------------------------------------------------------------
# Wrapper: padding, tiling, pallas_call
# ---------------------------------------------------------------------------
def compgcn_forward_isolated(ent_embed, params, *, tile_m=512):
    """Fused stack of CompGCNLayer.forward_isolated (dropout=0.0, bias=True).

    NOTE: forward_isolated adds a (d_out,) bias to the input embedding, so the
    semantics require d_in == d_out for every layer (as in the reference).
    """
    n, d = ent_embed.shape
    num_layers = len(params)

    w = jnp.stack([p["w_loop"] for p in params])                 # (L, D, D)
    b = jnp.stack([p["w_bias"].reshape(1, d) for p in params])   # (L, 1, D)

    # ---- lane-dense feature padding (multiple of 128) ---------------------
    dp = _round_up(d, 128)
    if dp != d:
        pad = dp - d
        ent_embed = jnp.pad(ent_embed, ((0, 0), (0, pad)))
        w = jnp.pad(w, ((0, 0), (0, pad), (0, pad)))
        b = jnp.pad(b, ((0, 0), (0, 0), (0, pad)))
        # padded columns: tanh(0 + 0 + x @ 0) = 0, stable across layers.

    # ---- row tiling (multiple of 8), pad N up to a whole number of tiles --
    tile_m = max(8, min(tile_m, _round_up(n, 8)))
    n_pad = _round_up(n, tile_m)
    if n_pad != n:
        ent_embed = jnp.pad(ent_embed, ((0, n_pad - n), (0, 0)))

    w_bf16 = w.astype(jnp.bfloat16)          # halve weight VMEM / HBM traffic
    grid = (n_pad // tile_m,)

    cost = pl.CostEstimate(
        flops=2 * n_pad * dp * dp * num_layers,
        transcendentals=n_pad * dp * num_layers,
        bytes_accessed=(n_pad * dp * 4            # x in
                        + n_pad * dp * 4          # out
                        + int(w_bf16.size) * 2    # weights (bf16)
                        + int(b.size) * 4),       # biases
    )

    out = pl.pallas_call(
        _compgcn_fused_kernel,
        out_shape=jax.ShapeDtypeStruct((n_pad, dp), jnp.float32),
        grid=grid,
        in_specs=[
            pl.BlockSpec((tile_m, dp), lambda i: (i, 0)),            # x tile
            pl.BlockSpec((num_layers, dp, dp), lambda i: (0, 0, 0)), # resident
            pl.BlockSpec((num_layers, 1, dp), lambda i: (0, 0, 0)),  # resident
        ],
        out_specs=pl.BlockSpec((tile_m, dp), lambda i: (i, 0)),
        compiler_params=pltpu.CompilerParams(
            dimension_semantics=("parallel",),
        ),
        cost_estimate=cost,
    )(ent_embed, w_bf16, b)

    return out[:n, :d]


# ---------------------------------------------------------------------------
# Parameter init (mirrors reset_parameters)
# ---------------------------------------------------------------------------
def _xavier_normal(key, shape, gain):
    fan_in, fan_out = shape[0], shape[1]
    std = gain * math.sqrt(2.0 / (fan_in + fan_out))
    return std * jax.random.normal(key, shape, dtype=jnp.float32)


def init_compgcn_params(key, layer_num, input_size, hidden_size, output_size):
    """Per-layer params: (w_loop, w_in, loop_rel, w_bias). Only w_loop/w_bias
    are used by forward_isolated; the rest exist for shape fidelity."""
    gain = math.sqrt(2.0)  # calculate_gain('relu')
    params = []
    for idx in range(layer_num):
        if idx == 0:
            d_in, d_out = input_size, hidden_size
        elif idx == layer_num - 1:
            d_in, d_out = hidden_size, output_size
        else:
            d_in, d_out = hidden_size, hidden_size
        key, k1, k2, k3 = jax.random.split(key, 4)
        params.append(dict(
            w_loop=_xavier_normal(k1, (d_in, d_out), gain),
            w_in=_xavier_normal(k2, (d_in, d_out), gain),
            loop_rel=_xavier_normal(k3, (1, d_in), gain),
            w_bias=jnp.zeros((d_out,), dtype=jnp.float32),  # zeros_ per spec
        ))
    return params


# ---------------------------------------------------------------------------
# Pure-JAX reference (matching bf16-MXU precision) for correctness checks
# ---------------------------------------------------------------------------
def compgcn_forward_isolated_ref(ent_embed, params):
    x = ent_embed
    for p in params:
        loop_msg = jnp.dot(x.astype(jnp.bfloat16),
                           p["w_loop"].astype(jnp.bfloat16),
                           preferred_element_type=jnp.float32)
        x = jnp.tanh(x + p["w_bias"] + loop_msg)
    return x


if __name__ == "__main__":
    key = jax.random.PRNGKey(0)
    key, k_x, k_p, k_b = jax.random.split(key, 4)

    N = 256           # number of entities (nodes) -> 2 row tiles of 128
    D = 128           # input = hidden = output size (lane-dense, full vreg)
    LAYER_NUM = 2     # args.gnn_layer_num
    # args.dropout = 0.0, args.comp_op = 'mult', args.base_num = 4 (unused here)

    ent_embed = jax.random.normal(k_x, (N, D), dtype=jnp.float32)
    params = init_compgcn_params(k_p, LAYER_NUM, D, D, D)

    # reset_parameters zero-inits w_bias; use small random biases in the test
    # so the bias-add path is actually exercised (semantics unchanged).
    for i, kb in enumerate(jax.random.split(k_b, LAYER_NUM)):
        params[i]["w_bias"] = 0.1 * jax.random.normal(kb, (D,), jnp.float32)

    out = compgcn_forward_isolated(ent_embed, params, tile_m=128)
    out = jax.block_until_ready(out)

    ref = compgcn_forward_isolated_ref(ent_embed, params)
    assert out.shape == (N, D)
    assert jnp.allclose(out, ref, atol=2e-3, rtol=2e-3), "mismatch vs reference"

    print("KERNEL_OK")
</pallas_src>

<mosaic_0001>
module attributes {stable_mosaic.version = 11 : i64} {
  func.func @_compgcn_fused_kernel(%arg0: i32, %arg1: memref<128x128xf32, #tpu.memory_space<vmem>>, %arg2: memref<2x128x128xbf16, #tpu.memory_space<vmem>>, %arg3: memref<2x1x128xf32, #tpu.memory_space<vmem>>, %arg4: memref<128x128xf32, #tpu.memory_space<vmem>>) attributes {dimension_semantics = [#tpu.dimension_semantics<parallel>], iteration_bounds = array<i64: 2>, scalar_prefetch = 0 : i64, scratch_operands = 0 : i64, tpu.core_type = #tpu.core_type<tc>, window_params = [{transform_indices = @transform_0, window_bounds = array<i64: 128, 128>}, {pipeline_mode = #tpu.pipeline_mode<synchronous>, transform_indices = @transform_1, window_bounds = array<i64: 2, 128, 128>}, {pipeline_mode = #tpu.pipeline_mode<synchronous>, transform_indices = @transform_2, window_bounds = array<i64: 2, 1, 128>}, {transform_indices = @transform_3, window_bounds = array<i64: 128, 128>}]} {
    %c0 = arith.constant 0 : index
    %c0_0 = arith.constant 0 : index
    %0 = vector.load %arg1[%c0, %c0_0] : memref<128x128xf32, #tpu.memory_space<vmem>>, vector<128x128xf32>
    %c0_1 = arith.constant 0 : index
    %c0_2 = arith.constant 0 : index
    %c0_3 = arith.constant 0 : index
    %1 = vector.load %arg2[%c0_1, %c0_2, %c0_3] : memref<2x128x128xbf16, #tpu.memory_space<vmem>>, vector<1x128x128xbf16>
    %2 = vector.shape_cast %1 : vector<1x128x128xbf16> to vector<128x128xbf16>
    %c0_4 = arith.constant 0 : index
    %c0_5 = arith.constant 0 : index
    %c0_6 = arith.constant 0 : index
    %3 = vector.load %arg3[%c0_4, %c0_5, %c0_6] : memref<2x1x128xf32, #tpu.memory_space<vmem>>, vector<1x1x128xf32>
    %4 = vector.shape_cast %3 : vector<1x1x128xf32> to vector<1x128xf32>
    %5 = arith.truncf %0 : vector<128x128xf32> to vector<128x128xbf16>
    %cst = arith.constant dense<0.000000e+00> : vector<128x128xf32>
    %6 = tpu.matmul %5, %2, %cst {dimension_numbers = #tpu.dot_dimension_numbers<[1], [0], [0], [1], [0, 0, 1, 1], [], []>} : vector<128x128xbf16>, vector<128x128xbf16>, vector<128x128xf32> -> vector<128x128xf32>
    %7 = vector.broadcast %4 : vector<1x128xf32> to vector<128x128xf32>
    %8 = arith.addf %0, %7 : vector<128x128xf32>
    %9 = arith.addf %8, %6 : vector<128x128xf32>
    %10 = math.tanh %9 : vector<128x128xf32>
    %c1 = arith.constant 1 : index
    %c0_7 = arith.constant 0 : index
    %c0_8 = arith.constant 0 : index
    %11 = vector.load %arg2[%c1, %c0_7, %c0_8] : memref<2x128x128xbf16, #tpu.memory_space<vmem>>, vector<1x128x128xbf16>
    %12 = vector.shape_cast %11 : vector<1x128x128xbf16> to vector<128x128xbf16>
    %c1_9 = arith.constant 1 : index
    %c0_10 = arith.constant 0 : index
    %c0_11 = arith.constant 0 : index
    %13 = vector.load %arg3[%c1_9, %c0_10, %c0_11] : memref<2x1x128xf32, #tpu.memory_space<vmem>>, vector<1x1x128xf32>
    %14 = vector.shape_cast %13 : vector<1x1x128xf32> to vector<1x128xf32>
    %15 = arith.truncf %10 : vector<128x128xf32> to vector<128x128xbf16>
    %cst_12 = arith.constant dense<0.000000e+00> : vector<128x128xf32>
    %16 = tpu.matmul %15, %12, %cst_12 {dimension_numbers = #tpu.dot_dimension_numbers<[1], [0], [0], [1], [0, 0, 1, 1], [], []>} : vector<128x128xbf16>, vector<128x128xbf16>, vector<128x128xf32> -> vector<128x128xf32>
    %17 = vector.broadcast %14 : vector<1x128xf32> to vector<128x128xf32>
    %18 = arith.addf %10, %17 : vector<128x128xf32>
    %19 = arith.addf %18, %16 : vector<128x128xf32>
    %20 = math.tanh %19 : vector<128x128xf32>
    %c0_13 = arith.constant 0 : index
    %c0_14 = arith.constant 0 : index
    %21 = vector.load %arg4[%c0_13, %c0_14] : memref<128x128xf32, #tpu.memory_space<vmem>>, vector<128x128xf32>
    tpu.vector_store %arg4[%c0_13, %c0_14], %20 {strides = array<i32>} : memref<128x128xf32, #tpu.memory_space<vmem>>, vector<128x128xf32>,
    return
  }
  func.func @transform_0(%arg0: i32) -> (i32, i32) {
    %c0_i32 = arith.constant 0 : i32
    %c0_i32_0 = arith.constant 0 : i32
    return %arg0, %c0_i32 : i32, i32
  }
  func.func @transform_1(%arg0: i32) -> (i32, i32, i32) {
    %c0_i32 = arith.constant 0 : i32
    %c0_i32_0 = arith.constant 0 : i32
    %c0_i32_1 = arith.constant 0 : i32
    %c0_i32_2 = arith.constant 0 : i32
    return %c0_i32, %c0_i32_0, %c0_i32_1 : i32, i32, i32
  }
  func.func @transform_2(%arg0: i32) -> (i32, i32, i32) {
    %c0_i32 = arith.constant 0 : i32
    %c0_i32_0 = arith.constant 0 : i32
    %c0_i32_1 = arith.constant 0 : i32
    %c0_i32_2 = arith.constant 0 : i32
    return %c0_i32, %c0_i32_0, %c0_i32_1 : i32, i32, i32
  }
  func.func @transform_3(%arg0: i32) -> (i32, i32) {
    %c0_i32 = arith.constant 0 : i32
    %c0_i32_0 = arith.constant 0 : i32
    return %arg0, %c0_i32 : i32, i32
  }
}

</mosaic_0001>

<bundles_post_ra>
// kernel: tpu_custom_call.1
= control target key start
LH: loop header
LB: loop body
LE: loop exit
PB: predicated region body
PF: predicated region fallthrough
CT: control target
= control target key end

     0   :  { %8 = vsyncpa [#allocation3], 0  ;;  %s1577_s0 = inlined_call_operand.hbm [shape: f32[256,128], index: 0, kind: input, shape index: {}]   ;;  %s1578_s1 = inlined_call_operand.hbm [shape: bf16[2,128,128], index: 1, kind: input, shape index: {}]   ;;  %s1579_s2 = inlined_call_operand.vmem [shape: f32[2,1,128], index: 2, kind: input, shape index: {}]   ;;  %s1580_s3 = inlined_call_operand.hbm [shape: f32[256,128], index: 3, kind: output, shape index: {}]  }
   0x1   :  { %10 = vsyncpa [#allocation3 + $0x1], 0 }
   0x2   :  { %11 = vsyncpa [#allocation6], 0 }
   0x3   :  { %12 = vsyncpa [#allocation4], 0 }
   0x4   :  { %14 = vsyncpa [#allocation4 + $0x1], 0  ;;  %s1221_s12 = smov 0   ;;  %s1223_s13 = smov 0  }
   0x5   :  { %s1225_s14 = smov 0   ;;  %s1227_s15 = smov 0  }
   0x6 LB: > { %s1242_s16 = sadd.s32 4294967295, %s1190_s15   ;;  %s786_s17 = sadd.s32 4294967294, %s1190_s15   ;;  %s1190_s15 = sphi %s1227_s15, %s1600_s15   ;;  %s1186_s14 = sphi %s1225_s14, %s1599_s14   ;;  %s1182_s13 = sphi %s1223_s13, %s1598_s13   ;;  %s1178_s12 = sphi %s1221_s12, %s1597_s12  }
   0x7   : > { %p40_p0 = scmp.ne.s32.totalorder %s1182_s13, %s1178_s12  ;;  %p1581_p1 = scmp.eq.s32.totalorder %s1242_s16, 0 }
   0x8   : > { %p112_p3 = scmp.eq.s32.totalorder %s786_s17, 1  ;;  %p787_p5 = scmp.ge.s32.totalorder %s1190_s15, 1 }
   0x9   : > { %p1251_p4 = por %p1581_p1, %p40_p0  ;;  %p119_p7 = scmp.lt.s32.totalorder %s1190_s15, 3 }
   0xa   : > { %p1256_p6 = por %p112_p3, %p40_p0  ;;  %s1192_s21 = smov [#allocation5]  }
   0xb   : > { %s1584_s18 = scalar_select %p1251_p4, 1, 0 }
   0xc   : > { %s1585_s19 = scalar_select %p1256_p6, 1, 0 }
   0xd   : > { %p1261_p8 = pnand %p787_p5, %p119_p7  ;;  %s131_s22 = sshll.u32 %s1192_s21, 4  ;;  %s1265_s22 = int_to_ptr.vmem [resolvable:$true] %s131_s22 }
   0xe   : > { %s1277_s24 = sadd.s32 1, %s1190_s15   ;;  %s27_s25 = sadd.s32 1, %s1186_s14 }
   0xf   : > { %s1586_s20 = scalar_select %p1261_p8, 1, 0 }
  0x10   : > { %p927_p9 = pneg %p1261_p8  ;;  %s24_s26 = ssub.s32 %s1190_s15, %s1277_s24 }
  0x11   : > { %s1062_s29 = scalar_lea.hbm %s1578_s1, 2048 }
  0x12   : > { %p1272_p11 = pnand %p927_p9, %p1581_p1  ;;  %p1063_p12 = scmp.ne.s32.totalorder %s1578_s1, %s1062_s29 }
  0x13   : > { %p1069_p5 = scmp.lt.u32.totalorder %s1062_s29, %s1578_s1 }
  0x14   : > { %p1064_p13 = pneg %p1272_p11 }
  0x16   : > { %p1065_p0 = pnand %p1064_p13, %p1063_p12 }
  0x18   : > { %p1066_p3 = pneg %p1065_p0 }
  0x1a   : > { %p1071_p7 = pnand %p1069_p5, %p1066_p3 }
  0x1c   : > { %1074 = shalt.err (!%p1071_p7)
}
  0x1d   : > { %s1075_s7 = scalar_lea.vmem %s1265_s22, 2048  ;;  %p1083_p2 = scmp.lt.s32.totalorder %s1265_s22, %s1265_s22 }
  0x1e   : > { %p1076_p9 = scmp.ne.s32.totalorder %s1265_s22, %s1075_s7  ;;  %p1084_p6 = scmp.lt.s32.totalorder %s1075_s7, %s1075_s7 }
  0x20   : > { %p1078_p10 = pnand %p1076_p9, %p1064_p13  ;;  %p1085_p4 = por %p1084_p6, %p1083_p2 }
  0x22   : > { %p1079_p1 = pneg %p1078_p10 }
  0x24   : > { %p1086_p8 = pnand %p1085_p4, %p1079_p1 }
  0x26   : > { %1089 = shalt.err (!%p1086_p8)
}
  0x27   : > { %s1193_s8 = smov 64   ;;  %s1194_s9 = smov 4  }
  0x28   : > { %930 = dma.hbm_to_vmem [thread:$0]  (!%p1272_p11), %s1578_s1, 2048, %s1265_s22, [#allocation6], %s1193_s8, %s1193_s8, %s1194_s9  }
  0x29   : > { %p25_p2 = scmp.eq.s32.totalorder %s24_s26, 0  ;;  %p34_p1 = scmp.ne.s32.totalorder %s1186_s14, %s1182_s13 }
  0x2a   : > { %p35_p4 = scmp.eq.s32.totalorder %s1190_s15, 0  ;;  %p940_p6 = scmp.lt.s32.totalorder %s1190_s15, 2 }
  0x2b   : > { %s1308_s17 = scalar_select %p25_p2, %s1186_s14, %s27_s25  }
  0x2c   : > { %p36_p8 = por %p35_p4, %p34_p1  ;;  %p1588_p10 = scmp.eq.s32.totalorder %s1242_s16, 1 }
  0x2d   : > { %s148_s27 = sand.u32 1, %s1186_s14   ;;  %s821_s28 = sshll.u32 %s1190_s15, 11 }
  0x2e   : > { %p1312_p12 = por %p1588_p10, %p34_p1  ;;  %s790_s29 = sshll.u32 %s148_s27, 7 }
  0x2f   : > { %s1321_s4 = scalar_lea.hbm %s1577_s0, %s821_s28  ;;  %s152_s22 = scalar_lea.vmem [#allocation2], %s790_s29 }
  0x30   : > { %s159_s25 = sshll.u32 %s152_s22, 4  ;;  %p1323_p11 = pnand %p940_p6, %p36_p8  ;;  %s1327_s25 = int_to_ptr.vmem [resolvable:$true] %s159_s25 }
  0x31   : > { %s1329_s5 = scalar_lea.sflag [#allocation3], %s148_s27  ;;  %s1090_s6 = scalar_lea.hbm %s1321_s4, 2048 }
  0x32   : > { %p1091_p13 = scmp.ne.s32.totalorder %s1321_s4, %s1090_s6  ;;  %p1092_p0 = pneg %p1323_p11 }
  0x33   : > { %s1095_s9 = scalar_lea.hbm %s1577_s0, 4096  ;;  %p1096_p7 = scmp.lt.u32.totalorder %s1321_s4, %s1577_s0 }
  0x34   : > { %p1093_p3 = pnand %p1092_p0, %p1091_p13  ;;  %p1097_p9 = scmp.lt.u32.totalorder %s1095_s9, %s1090_s6 }
  0x35   : > { %p1099_p1 = scmp.lt.u32.totalorder %s1090_s6, %s1321_s4 }
  0x36   : > { %p1094_p5 = pneg %p1093_p3  ;;  %p1098_p2 = por %p1097_p9, %p1096_p7 }
  0x38   : > { %p1100_p4 = por %p1099_p1, %p1098_p2 }
  0x3a   : > { %p1101_p6 = pnand %p1100_p4, %p1094_p5 }
  0x3c   : > { %1104 = shalt.err (!%p1101_p6)
}
  0x3d   : > { %s1105_s27 = scalar_lea.vmem %s1327_s25, 2048  ;;  %s1195_s28 = smov [#allocation2]  }
  0x3e   : > { %p1106_p8 = scmp.ne.s32.totalorder %s1327_s25, %s1105_s27  ;;  %s1110_s29 = sshll.u32 %s1195_s28, 4  ;;  %s1111_s29 = int_to_ptr.vmem [resolvable:$false] %s1110_s29 }
  0x3f   : > { %s1112_s23 = scalar_lea.vmem %s1111_s29, 4096  ;;  %p1113_p3 = scmp.lt.s32.totalorder %s1327_s25, %s1111_s29 }
  0x40   : > { %p1108_p10 = pnand %p1106_p8, %p1092_p0  ;;  %p1114_p7 = scmp.lt.s32.totalorder %s1112_s23, %s1105_s27 }
  0x42   : > { %p1109_p13 = pneg %p1108_p10  ;;  %p1115_p9 = por %p1114_p7, %p1113_p3 }
  0x44   : > { %p1116_p2 = pnand %p1115_p9, %p1109_p13 }
  0x46   : > { %1119 = shalt.err (!%p1116_p2)
}
  0x47   : > { %s1196_s30 = smov 128   ;;  %s1197_s22 = smov 8  }
  0x48   : > { %934 = dma.hbm_to_vmem [thread:$0]  (!%p1323_p11), %s1321_s4, 2048, %s1327_s25, %s1329_s5, %s1196_s30, %s1196_s30, %s1197_s22  }
  0x49   : > { %p1591_p0 = scmp.ne.s32.totalorder %s1586_s20, 0 }
  0x4a   : > { %s1360_s6 = sand.u32 (!%p1591_p0), 1, %s1182_s13   ;;  %p1592_p5 = scmp.ne.s32.totalorder (!%p1591_p0), %s1584_s18, 0 }
  0x4b   : > { %171 = sbr.rel (%p1591_p0) target bundleno = 617 (0x269), region = 32  ;;  %s794_s7 = sshll.u32 (!%p1591_p0), %s1360_s6, 7 }
  0x4c   : > { %s174_s8 = scalar_lea.sflag (!%p1591_p0), [#allocation3], %s1360_s6  ;;  %s1366_s9 = scalar_lea.vmem (!%p1591_p0), [#allocation2], %s794_s7 }
  0x52   : > { %1165 = dma.done.wait (%p1592_p5), %s174_s8, 2048  }
  0x53   : > { %1167 = vsyncadd (%p1592_p5), %s174_s8, 4294965248  ;;  %p1593_p11 = scmp.eq.s32.totalorder %s1242_s16, 0 }
  0x55   : > { %1169 = dma.done.wait (%p1593_p11), [#allocation6], 2048   ;;  %p1594_p1 = pmov %p1593_p11 }
  0x56   : > { %v982_v0 = vld [vmem:[#allocation5] sm:$0xff]   ;;  %v983_v1 = vld [vmem:[#allocation5 + $0x8] sm:$0xff]   ;;  %v984_v2 = vld [vmem:[#allocation5 + $0x10] sm:$0xff]   ;;  %s1495_s26 = scalar_lea.vmem [#allocation7], %s794_s7  ;;  %s822_s5 = sshll.u32 %s1242_s16, 11 }
  0x57   : > { %1171 = vsyncadd (%p1594_p1), [#allocation6], 4294965248  ;;  %855 = vmatprep.subr.bf16.mxu0 %v982_v0  ;;  %v985_v3 = vld [vmem:[#allocation5 + $0x18] sm:$0xff]   ;;  %v1377_v4 = vld [vmem:[%s1366_s9] sm:$0xff]  ;;  %s703_s10 = sshll.u32 %s1495_s26, 4  ;;  %s1528_s28 = scalar_lea.hbm %s1580_s3, %s822_s5  ;;  %s1530_s10 = int_to_ptr.vmem [resolvable:$true] %s703_s10 }
  0x58   : > { %856 = vmatpush3.bf16.msra.mxu0 %v982_v0  ;;  %v1380_v5 = vld [vmem:[%s1366_s9 + $0x8] sm:$0xff]  ;;  %v986_v7 = vld [vmem:[#allocation5 + $0x20] sm:$0xff]   ;;  %v992_v11 = vld [vmem:[#allocation5 + $0x50] sm:$0xff]   ;;  %s690_s16 = scalar_lea.sflag [#allocation4], %s1360_s6  ;;  %s1120_s29 = scalar_lea.vmem %s1530_s10, 2048 }
  0x59   : > { %857 = vmatprep.subr.bf16.mxu0 %v983_v1  ;;  %v240_v6 = vpack.c.bf16 %v1380_v5, %v1377_v4  ;;  %v987_v8 = vld [vmem:[#allocation5 + $0x28] sm:$0xff]   ;;  %v990_v9 = vld [vmem:[#allocation5 + $0x40] sm:$0xff]   ;;  %v988_v12 = vld [vmem:[#allocation5 + $0x30] sm:$0xff]   ;;  %p1121_p4 = scmp.ne.s32.totalorder %s1530_s10, %s1120_s29  ;;  %s1198_s23 = smov [#allocation7]  }
  0x5a   : > { %v991_v10 = vld [vmem:[#allocation5 + $0x48] sm:$0xff]   ;;  %887 = vmatprep.subr.bf16.mxu1 %v990_v9  ;;  %v989_v13 = vld [vmem:[#allocation5 + $0x38] sm:$0xff]   ;;  %v209_v14 = vld [vmem:[%s1366_s9 + $0x10] sm:$0xff]  ;;  %s1124_s30 = sshll.u32 %s1198_s23, 4  ;;  %s1125_s30 = int_to_ptr.vmem [resolvable:$false] %s1124_s30 }
  0x5b   : > { %871 = vmatprep.mubr.bf16.mxu0 %v240_v6  ;;  %888 = vmatpush3.bf16.msra.mxu1 %v990_v9  ;;  %v210_v15 = vld [vmem:[%s1366_s9 + $0x18] sm:$0xff]  ;;  %v211_v16 = vld [vmem:[%s1366_s9 + $0x20] sm:$0xff]  ;;  %v212_v17 = vld [vmem:[%s1366_s9 + $0x28] sm:$0xff]  ;;  %p1122_p6 = pnand %p1121_p4, %p1312_p12  ;;  %s1126_s22 = scalar_lea.vmem %s1125_s30, 4096 }
  0x5c   : > { %858 = vmatpush3.bf16.msra.mxu0 %v983_v1  ;;  %889 = vmatprep.subr.bf16.mxu1 %v991_v10  ;;  %v241_v18 = vpack.c.bf16 %v210_v15, %v209_v14  ;;  %v242_v19 = vpack.c.bf16 %v212_v17, %v211_v16  ;;  %v213_v20 = vld [vmem:[%s1366_s9 + $0x30] sm:$0xff]  ;;  %v214_v21 = vld [vmem:[%s1366_s9 + $0x38] sm:$0xff]  ;;  %v1391_v22 = vld [vmem:[%s1366_s9 + $0x40] sm:$0xff]  ;;  %p1127_p10 = scmp.lt.s32.totalorder %s1530_s10, %s1125_s30  ;;  %p1128_p13 = scmp.lt.s32.totalorder %s1126_s22, %s1120_s29 }
  0x5d   : > { %859 = vmatprep.subr.bf16.mxu0 %v984_v2  ;;  %v1394_v23 = vld [vmem:[%s1366_s9 + $0x48] sm:$0xff]  ;;  %v243_v24 = vpack.c.bf16 %v214_v21, %v213_v20  ;;  %v217_v26 = vld [vmem:[%s1366_s9 + $0x50] sm:$0xff]  ;;  %v1400_v27 = vld [vmem:[%s1366_s9 + $0x58] sm:$0xff]  ;;  %p1123_p8 = pneg %p1122_p6 }
  0x5e   : > { %v244_v25 = vpack.c.bf16 %v1394_v23, %v1391_v22  ;;  %v1403_v28 = vld [vmem:[%s1366_s9 + $0x60] sm:$0xff]  ;;  %v1406_v29 = vld [vmem:[%s1366_s9 + $0x68] sm:$0xff]  ;;  %v245_v30 = vpack.c.bf16 %v1400_v27, %v217_v26  ;;  %v1412_v32 = vld [vmem:[%s1366_s9 + $0x70] sm:$0xff]  ;;  %p1129_p3 = por %p1128_p13, %p1127_p10 }
  0x5f   : > { %890 = vmatpush3.bf16.msra.mxu1 %v991_v10  ;;  %v246_v31 = vpack.c.bf16 %v1406_v29, %v1403_v28  ;;  %v1415_v33 = vld [vmem:[%s1366_s9 + $0x78] sm:$0xff]  ;;  %v994_v36 = vld [vmem:[#allocation5 + $0x60] sm:$0xff]   ;;  %v995_v37 = vld [vmem:[#allocation5 + $0x68] sm:$0xff]  }
  0x60   : > { %860 = vmatpush3.bf16.msra.mxu0 %v984_v2  ;;  %891 = vmatprep.subr.bf16.mxu1 %v992_v11  ;;  %v247_v34 = vpack.c.bf16 %v1415_v33, %v1412_v32  ;;  %v993_v35 = vld [vmem:[#allocation5 + $0x58] sm:$0xff]   ;;  %v996_v38 = vld [vmem:[#allocation5 + $0x70] sm:$0xff]   ;;  %v1422_v40 = vld [vmem:[%s1579_s2] ss:$0 sm:$0xff]  ;;  %p1130_p7 = pnand %p1129_p3, %p1123_p8 }
  0x61   : > { %861 = vmatprep.subr.bf16.mxu0 %v985_v3  ;;  %v997_v39 = vld [vmem:[#allocation5 + $0x78] sm:$0xff]   ;;  %v401_v41 = vadd.f32 %v1422_v40, %v209_v14  ;;  %v399_v42 = vadd.f32 %v1422_v40, %v1377_v4  ;;  %v402_v43 = vadd.f32 %v1422_v40, %v210_v15  ;;  %v400_v44 = vadd.f32 %v1422_v40, %v1380_v5 }
  0x62   : > { %v405_v53 = vadd.f32 %v1422_v40, %v213_v20  ;;  %v403_v54 = vadd.f32 %v1422_v40, %v211_v16  ;;  %v406_v55 = vadd.f32 %v1422_v40, %v214_v21  ;;  %v404_v57 = vadd.f32 %v1422_v40, %v212_v17 }
  0x63   : > { %892 = vmatpush3.bf16.msra.mxu1 %v992_v11  ;;  %v409_v2 = vadd.f32 %v1422_v40, %v217_v26  ;;  %v407_v4 = vadd.f32 %v1422_v40, %v1391_v22  ;;  %v410_v6 = vadd.f32 %v1422_v40, %v1400_v27  ;;  %v408_v9 = vadd.f32 %v1422_v40, %v1394_v23 }
  0x64   : > { %862 = vmatpush3.bf16.msra.mxu0 %v985_v3  ;;  %893 = vmatprep.subr.bf16.mxu1 %v993_v35  ;;  %v413_v20 = vadd.f32 %v1422_v40, %v1412_v32  ;;  %v411_v22 = vadd.f32 %v1422_v40, %v1403_v28  ;;  %v412_v27 = vadd.f32 %v1422_v40, %v1406_v29 }
  0x65   : > { %863 = vmatprep.subr.bf16.mxu0 %v986_v7 }
  0x67   : > { %894 = vmatpush3.bf16.msra.mxu1 %v993_v35 }
  0x68   : > { %864 = vmatpush3.bf16.msra.mxu0 %v986_v7  ;;  %895 = vmatprep.subr.bf16.mxu1 %v994_v36 }
  0x69   : > { %865 = vmatprep.subr.bf16.mxu0 %v987_v8 }
  0x6b   : > { %896 = vmatpush3.bf16.msra.mxu1 %v994_v36 }
  0x6c   : > { %866 = vmatpush3.bf16.msra.mxu0 %v987_v8  ;;  %897 = vmatprep.subr.bf16.mxu1 %v995_v37 }
  0x6d   : > { %867 = vmatprep.subr.bf16.mxu0 %v988_v12 }
  0x6f   : > { %898 = vmatpush3.bf16.msra.mxu1 %v995_v37 }
  0x70   : > { %868 = vmatpush3.bf16.msra.mxu0 %v988_v12  ;;  %899 = vmatprep.subr.bf16.mxu1 %v996_v38 }
  0x71   : > { %869 = vmatprep.subr.bf16.mxu0 %v989_v13 }
  0x73   : > { %900 = vmatpush3.bf16.msra.mxu1 %v996_v38 }
  0x74   : > { %870 = vmatpush3.bf16.msra.mxu0 %v989_v13  ;;  %901 = vmatprep.subr.bf16.mxu1 %v997_v39 }
  0x77   : > { %872 = vmatmul.mubr.bf16.vlgmr.msra.gmra.mrb[0].mxu0 %v241_v18  ;;  %902 = vmatpush3.bf16.msra.mxu1 %v997_v39 }
  0x78   : > { %875 = vmatprep.mubr.bf16.mxu0 %v242_v19 }
  0x7f   : > { %876 = vmatmul.mubr.bf16.gmra.mrb[4].mxu0 %v243_v24  ;;  %v414_v24 = vadd.f32 %v1422_v40, %v1415_v33 }
  0x80   : > { %879 = vmatprep.mubr.bf16.mxu0 %v244_v25 }
  0x87   : > { %880 = vmatmul.mubr.bf16.gmra.mrb[8].mxu0 %v245_v30 }
  0x88   : > { %883 = vmatprep.mubr.bf16.mxu0 %v246_v31 }
  0x8f   : > { %884 = vmatmul.mubr.bf16.gmra.mrb[12].mxu0 %v247_v34 }
 0x14a   : > { %v873_v45 = vpop.f32.mrb[0].mxu0 }
 0x14b   : > { %v417_v46 = vadd.f32 %v873_v45, %v401_v41  ;;  %v330_v47 = vpop.f32.mrb[1].mxu0 }
 0x14c   : > { %v415_v48 = vadd.f32 %v399_v42, %v330_v47  ;;  %v874_v49 = vpop.f32.mrb[2].mxu0 }
 0x14d   : > { %998 = vtanh.f32 %v417_v46  ;;  %v418_v50 = vadd.f32 %v874_v49, %v402_v43  ;;  %v333_v51 = vpop.f32.mrb[3].mxu0  ;;  %v1479_v49 = vld [vmem:[%s1579_s2 + $0x1] ss:$0 sm:$0xff] }
 0x14e   : > { %1000 = vtanh.f32 %v415_v48  ;;  %v416_v52 = vadd.f32 %v400_v44, %v333_v51 }
 0x14f   : > { %1002 = vtanh.f32 %v418_v50 }
 0x150   : > { %1004 = vtanh.f32 %v416_v52 }
 0x152   : > { %v877_v56 = vpop.f32.mrb[4].mxu0 }
 0x153   : > { %v421_v58 = vadd.f32 %v877_v56, %v405_v53  ;;  %v346_v59 = vpop.f32.mrb[5].mxu0 }
 0x154   : > { %v419_v60 = vadd.f32 %v403_v54, %v346_v59  ;;  %v878_v61 = vpop.f32.mrb[6].mxu0 }
 0x155   : > { %1006 = vtanh.f32 %v421_v58  ;;  %v422_v62 = vadd.f32 %v878_v61, %v406_v55  ;;  %v349_v63 = vpop.f32.mrb[7].mxu0 }
 0x156   : > { %1008 = vtanh.f32 %v419_v60  ;;  %v420_v0 = vadd.f32 %v404_v57, %v349_v63 }
 0x157   : > { %v1434_v1 = vpop.eup %998  ;;  %1010 = vtanh.f32 %v422_v62 }
 0x158   : > { %v1437_v3 = vpop.eup %1000  ;;  %1012 = vtanh.f32 %v420_v0  ;;  %v627_v50 = vadd.f32 %v1434_v1, %v1479_v49 }
 0x159   : > { %v1441_v5 = vpop.eup %1002  ;;  %v625_v52 = vadd.f32 %v1437_v3, %v1479_v49 }
 0x15a   : > { %v1445_v7 = vpop.eup %1004  ;;  %v881_v8 = vpop.f32.mrb[8].mxu0  ;;  %v467_v10 = vpack.c.bf16 %v1441_v5, %v1434_v1  ;;  %v628_v55 = vadd.f32 %v1441_v5, %v1479_v49 }
 0x15b   : > { %v425_v11 = vadd.f32 %v881_v8, %v409_v2  ;;  %v362_v12 = vpop.f32.mrb[9].mxu0  ;;  %v466_v13 = vpack.c.bf16 %v1445_v7, %v1437_v3  ;;  %v626_v58 = vadd.f32 %v1445_v7, %v1479_v49 }
 0x15c   : > { %v423_v14 = vadd.f32 %v407_v4, %v362_v12  ;;  %v882_v15 = vpop.f32.mrb[10].mxu0 }
 0x15d   : > { %1014 = vtanh.f32 %v425_v11  ;;  %v426_v16 = vadd.f32 %v882_v15, %v410_v6  ;;  %v365_v17 = vpop.f32.mrb[11].mxu0  ;;  %903 = vmatprep.mubr.bf16.mxu1 %v466_v13 }
 0x15e   : > { %1016 = vtanh.f32 %v423_v14  ;;  %v424_v18 = vadd.f32 %v408_v9, %v365_v17  ;;  %904 = vmatmul.mubr.bf16.vlgmr.msra.gmra.mrb[0].mxu1 %v467_v10 }
 0x15f   : > { %v1007_v19 = vpop.eup %1006  ;;  %1018 = vtanh.f32 %v426_v16 }
 0x160   : > { %v1009_v21 = vpop.eup %1008  ;;  %1020 = vtanh.f32 %v424_v18  ;;  %v631_v62 = vadd.f32 %v1007_v19, %v1479_v49 }
 0x161   : > { %v1011_v23 = vpop.eup %1010  ;;  %v629_v0 = vadd.f32 %v1009_v21, %v1479_v49 }
 0x162   : > { %v1013_v25 = vpop.eup %1012  ;;  %v885_v26 = vpop.f32.mrb[12].mxu0  ;;  %v469_v30 = vpack.c.bf16 %v1011_v23, %v1007_v19  ;;  %v632_v3 = vadd.f32 %v1011_v23, %v1479_v49 }
 0x163   : > { %v429_v31 = vadd.f32 %v885_v26, %v413_v20  ;;  %v378_v34 = vpop.f32.mrb[13].mxu0  ;;  %v468_v35 = vpack.c.bf16 %v1013_v25, %v1009_v21  ;;  %v630_v6 = vadd.f32 %v1013_v25, %v1479_v49 }
 0x164   : > { %v427_v36 = vadd.f32 %v411_v22, %v378_v34  ;;  %v886_v32 = vpop.f32.mrb[14].mxu0 }
 0x165   : > { %1022 = vtanh.f32 %v429_v31  ;;  %v430_v37 = vadd.f32 %v886_v32, %v414_v24  ;;  %v381_v38 = vpop.f32.mrb[15].mxu0  ;;  %907 = vmatprep.mubr.bf16.mxu1 %v468_v35 }
 0x166   : > { %1024 = vtanh.f32 %v427_v36  ;;  %v428_v28 = vadd.f32 %v412_v27, %v381_v38  ;;  %908 = vmatmul.mubr.bf16.gmra.mrb[4].mxu1 %v469_v30 }
 0x167   : > { %v1015_v39 = vpop.eup %1014  ;;  %1026 = vtanh.f32 %v430_v37 }
 0x168   : > { %v1017_v33 = vpop.eup %1016  ;;  %1028 = vtanh.f32 %v428_v28  ;;  %v635_v13 = vadd.f32 %v1015_v39, %v1479_v49 }
 0x169   : > { %v1019_v41 = vpop.eup %1018  ;;  %v633_v16 = vadd.f32 %v1017_v33, %v1479_v49 }
 0x16a   : > { %v1461_v42 = vpop.eup %1020  ;;  %v471_v29 = vpack.c.bf16 %v1019_v41, %v1015_v39  ;;  %v636_v19 = vadd.f32 %v1019_v41, %v1479_v49 }
 0x16b   : > { %v470_v40 = vpack.c.bf16 %v1461_v42, %v1017_v33  ;;  %v634_v22 = vadd.f32 %v1461_v42, %v1479_v49 }
 0x16d   : > { %911 = vmatprep.mubr.bf16.mxu1 %v470_v40 }
 0x16e   : > { %912 = vmatmul.mubr.bf16.gmra.mrb[8].mxu1 %v471_v29 }
 0x16f   : > { %v1464_v43 = vpop.eup %1022 }
 0x170   : > { %v1466_v44 = vpop.eup %1024  ;;  %v639_v31 = vadd.f32 %v1464_v43, %v1479_v49 }
 0x171   : > { %v1468_v45 = vpop.eup %1026  ;;  %v637_v36 = vadd.f32 %v1466_v44, %v1479_v49 }
 0x172   : > { %v1470_v46 = vpop.eup %1028  ;;  %v473_v47 = vpack.c.bf16 %v1468_v45, %v1464_v43  ;;  %v640_v38 = vadd.f32 %v1468_v45, %v1479_v49 }
 0x173   : > { %v472_v48 = vpack.c.bf16 %v1470_v46, %v1466_v44  ;;  %v638_v33 = vadd.f32 %v1470_v46, %v1479_v49 }
 0x175   : > { %915 = vmatprep.mubr.bf16.mxu1 %v472_v48 }
 0x176   : > { %916 = vmatmul.mubr.bf16.gmra.mrb[12].mxu1 %v473_v47 }
 0x231   : > { %v905_v51 = vpop.f32.mrb[0].mxu1 }
 0x232   : > { %v643_v53 = vadd.f32 %v905_v51, %v627_v50  ;;  %v556_v54 = vpop.f32.mrb[1].mxu1 }
 0x233   : > { %v641_v56 = vadd.f32 %v625_v52, %v556_v54  ;;  %v906_v57 = vpop.f32.mrb[2].mxu1 }
 0x234   : > { %1030 = vtanh.f32 %v643_v53  ;;  %v644_v59 = vadd.f32 %v906_v57, %v628_v55  ;;  %v559_v60 = vpop.f32.mrb[3].mxu1 }
 0x235   : > { %1032 = vtanh.f32 %v641_v56  ;;  %v642_v61 = vadd.f32 %v626_v58, %v559_v60 }
 0x236   : > { %1034 = vtanh.f32 %v644_v59 }
 0x237   : > { %1036 = vtanh.f32 %v642_v61 }
 0x239   : > { %v909_v63 = vpop.f32.mrb[4].mxu1 }
 0x23a   : > { %v647_v1 = vadd.f32 %v909_v63, %v631_v62  ;;  %v572_v2 = vpop.f32.mrb[5].mxu1 }
 0x23b   : > { %v645_v4 = vadd.f32 %v629_v0, %v572_v2  ;;  %v910_v5 = vpop.f32.mrb[6].mxu1 }
 0x23c   : > { %1038 = vtanh.f32 %v647_v1  ;;  %v648_v7 = vadd.f32 %v910_v5, %v632_v3  ;;  %v575_v8 = vpop.f32.mrb[7].mxu1 }
 0x23d   : > { %1040 = vtanh.f32 %v645_v4  ;;  %v646_v9 = vadd.f32 %v630_v6, %v575_v8 }
 0x23e   : > { %v1031_v10 = vpop.eup %1030  ;;  %1042 = vtanh.f32 %v648_v7 }
 0x23f   : > { %v1033_v11 = vpop.eup %1032  ;;  %675 = vst [vmem:[%s1495_s26 + $0x10] sm:$0xff] %v1031_v10  ;;  %1044 = vtanh.f32 %v646_v9 }
 0x240   : > { %v1035_v12 = vpop.eup %1034  ;;  %673 = vst [vmem:[%s1495_s26] sm:$0xff] %v1033_v11 }
 0x241   : > { %v1037_v14 = vpop.eup %1036  ;;  %676 = vst [vmem:[%s1495_s26 + $0x18] sm:$0xff] %v1035_v12  ;;  %v913_v15 = vpop.f32.mrb[8].mxu1 }
 0x242   : > { %674 = vst [vmem:[%s1495_s26 + $0x8] sm:$0xff] %v1037_v14  ;;  %v651_v17 = vadd.f32 %v913_v15, %v635_v13  ;;  %v588_v18 = vpop.f32.mrb[9].mxu1 }
 0x243   : > { %v649_v20 = vadd.f32 %v633_v16, %v588_v18  ;;  %v914_v21 = vpop.f32.mrb[10].mxu1 }
 0x244   : > { %1046 = vtanh.f32 %v651_v17  ;;  %v652_v23 = vadd.f32 %v914_v21, %v636_v19  ;;  %v591_v24 = vpop.f32.mrb[11].mxu1 }
 0x245   : > { %1048 = vtanh.f32 %v649_v20  ;;  %v650_v25 = vadd.f32 %v634_v22, %v591_v24 }
 0x246   : > { %v1039_v26 = vpop.eup %1038  ;;  %1050 = vtanh.f32 %v652_v23 }
 0x247   : > { %v1041_v27 = vpop.eup %1040  ;;  %679 = vst [vmem:[%s1495_s26 + $0x30] sm:$0xff] %v1039_v26  ;;  %1052 = vtanh.f32 %v650_v25 }
 0x248   : > { %v1043_v30 = vpop.eup %1042  ;;  %677 = vst [vmem:[%s1495_s26 + $0x20] sm:$0xff] %v1041_v27 }
 0x249   : > { %v1045_v34 = vpop.eup %1044  ;;  %680 = vst [vmem:[%s1495_s26 + $0x38] sm:$0xff] %v1043_v30  ;;  %v917_v35 = vpop.f32.mrb[12].mxu1 }
 0x24a   : > { %678 = vst [vmem:[%s1495_s26 + $0x28] sm:$0xff] %v1045_v34  ;;  %v655_v32 = vadd.f32 %v917_v35, %v639_v31  ;;  %v604_v37 = vpop.f32.mrb[13].mxu1 }
 0x24b   : > { %v653_v28 = vadd.f32 %v637_v36, %v604_v37  ;;  %v918_v39 = vpop.f32.mrb[14].mxu1 }
 0x24c   : > { %1054 = vtanh.f32 %v655_v32  ;;  %v656_v41 = vadd.f32 %v918_v39, %v640_v38  ;;  %v607_v42 = vpop.f32.mrb[15].mxu1 }
 0x24d   : > { %1056 = vtanh.f32 %v653_v28  ;;  %v654_v29 = vadd.f32 %v638_v33, %v607_v42 }
 0x24e   : > { %v1047_v40 = vpop.eup %1046  ;;  %1058 = vtanh.f32 %v656_v41 }
 0x24f   : > { %v1049_v43 = vpop.eup %1048  ;;  %683 = vst [vmem:[%s1495_s26 + $0x50] sm:$0xff] %v1047_v40  ;;  %1060 = vtanh.f32 %v654_v29 }
 0x250   : > { %v1051_v44 = vpop.eup %1050  ;;  %681 = vst [vmem:[%s1495_s26 + $0x40] sm:$0xff] %v1049_v43 }
 0x251   : > { %v1053_v45 = vpop.eup %1052  ;;  %684 = vst [vmem:[%s1495_s26 + $0x58] sm:$0xff] %v1051_v44 }
 0x252   : > { %682 = vst [vmem:[%s1495_s26 + $0x48] sm:$0xff] %v1053_v45 }
 0x256   : > { %v1055_v46 = vpop.eup %1054 }
 0x257   : > { %v1057_v47 = vpop.eup %1056  ;;  %687 = vst [vmem:[%s1495_s26 + $0x70] sm:$0xff] %v1055_v46 }
 0x258   : > { %v1059_v48 = vpop.eup %1058  ;;  %685 = vst [vmem:[%s1495_s26 + $0x60] sm:$0xff] %v1057_v47 }
 0x259   : > { %v1061_v49 = vpop.eup %1060  ;;  %688 = vst [vmem:[%s1495_s26 + $0x78] sm:$0xff] %v1059_v48 }
 0x25a   : > { %686 = vst [vmem:[%s1495_s26 + $0x68] sm:$0xff] %v1061_v49 }
 0x25b   : > { %1133 = shalt.err (!%p1130_p7)
}
 0x25c   : > { %s1134_s7 = scalar_lea.hbm %s1528_s28, 2048  ;;  %s1138_s18 = scalar_lea.hbm %s1580_s3, 4096 }
 0x25d   : > { %p1135_p9 = scmp.ne.s32.totalorder %s1528_s28, %s1134_s7  ;;  %p1139_p5 = scmp.lt.u32.totalorder %s1528_s28, %s1580_s3 }
 0x25e   : > { %p1140_p11 = scmp.lt.u32.totalorder %s1138_s18, %s1134_s7  ;;  %p1142_p4 = scmp.lt.u32.totalorder %s1134_s7, %s1528_s28 }
 0x25f   : > { %p1136_p2 = pnand %p1135_p9, %p1312_p12 }
 0x260   : > { %p1141_p1 = por %p1140_p11, %p1139_p5 }
 0x261   : > { %p1137_p0 = pneg %p1136_p2 }
 0x262   : > { %p1143_p6 = por %p1142_p4, %p1141_p1 }
 0x264   : > { %p1144_p8 = pnand %p1143_p6, %p1137_p0 }
 0x266   : > { %1147 = shalt.err (!%p1144_p8)
}
 0x267   : > { %s1199_s25 = smov 128   ;;  %s1200_s26 = smov 8  }
 0x268   : > { %925 = dma.vmem_to_hbm [thread:$0]  (%p1312_p12), %s1530_s10, 2048, %s1528_s28, %s690_s16, %s1199_s25, %s1199_s25, %s1200_s26  }
 0x269 PF: > { %s718_s5 = sand.u32 1, %s1178_s12   ;;  %p1595_p10 = scmp.ne.s32.totalorder %s1585_s19, 0 }
 0x26a   : > { %p1596_p13 = scmp.ge.s32.totalorder %s1190_s15, 2  ;;  %s719_s11 = scalar_lea.sflag [#allocation4], %s718_s5 }
 0x26c   : > { %p936_p3 = pnand %p1596_p13, %p1595_p10 }
 0x26e   : > { %1173 = dma.done.wait (!%p936_p3), %s719_s11, 2048  }
 0x26f   : > { %1175 = vsyncadd (!%p936_p3), %s719_s11, 4294965248  ;;  %p17_p7 = scmp.ge.s32.totalorder %s1277_s24, 4   ;;  %s1597_s12 = smov %s1182_s13 }
 0x270   : > { %s1598_s13 = smov %s1186_s14  ;;  %s1599_s14 = smov %s1308_s17 }
 0x271   : > { %s1600_s15 = smov %s1277_s24  ;;  %19 = sbr.rel (!%p17_p7) target bundleno = 6 (0x6), region = 83 }
 0x278   :  { %724 = vsyncpa [#allocation3], 1 }
 0x279   :  { %726 = vsyncpa [#allocation3 + $0x1], 1 }
 0x27a   :  { %727 = vsyncpa [#allocation6], 1 }
 0x27b   :  { %728 = vsyncpa [#allocation4], 1 }
 0x27c   :  { %730 = vsyncpa [#allocation4 + $0x1], 1 }

</bundles_post_ra>
